<compile_context>
chip_gen: v6e
topology: v6e:2x2x1
jax: 0.10.0
libtpu: 0.0.40
codegen_flags: <defaults>
</compile_context>

<pallas_src>
import functools

import jax
import jax.numpy as jnp
from jax import lax
from jax.experimental import pallas as pl
from jax.experimental.pallas import tpu as pltpu

DELTA = 5.0
SCALE = 112.5
LANES = 128
GROUP_ROWS = 256            # fori-loop row group inside a block (multiple of 16)
MAX_TILE_ROWS = 8192        # 8192 x 128 f32 = 4 MiB per input block
VMEM_LIMIT_BYTES = 40 * 1024 * 1024  # > v5e's 16 MiB default, < v7x 64 MiB physical


def _round_up(x, m):
    return ((x + m - 1) // m) * m


def _block_sum(p_ref, t_ref, *, tile_rows, group_rows, row_limit):
    """Sum of per-element Huber losses over one (tile_rows, 128) block.

    Returns an (8, 128) f32 partial (pure-VPU reduce, no XLU).  If `row_limit`
    is not None, rows with local index >= row_limit are masked to 0 (true
    select, so unspecified boundary-padding data is neutralized even if NaN).
    """
    num_groups = tile_rows // group_rows
    if row_limit is not None:
        row_iota = lax.broadcasted_iota(jnp.int32, (group_rows, LANES), 0)

    def body(g, acc):
        r0 = pl.multiple_of(g * group_rows, group_rows)
        pv = p_ref[pl.ds(r0, group_rows), :].astype(jnp.float32)
        tv = t_ref[pl.ds(r0, group_rows), :].astype(jnp.float32)
        d = pv - tv
        a = jnp.abs(d)
        per = jnp.where(a <= DELTA, 0.5 * d * d, DELTA * (a - 0.5 * DELTA))
        if row_limit is not None:
            # Compare against a scalar per-group limit (no elementwise offset add).
            per = jnp.where(row_iota < (row_limit - r0), per, jnp.float32(0.0))
        return acc + per.reshape(group_rows // 8, 8, LANES).sum(axis=0)

    init = jnp.zeros((8, LANES), jnp.float32)
    return lax.fori_loop(0, num_groups, body, init, unroll=False)


def _huber_partial_kernel(p_ref, t_ref, out_ref, *, tile_rows, group_rows,
                          valid_rows, needs_row_mask):
    if not needs_row_mask:
        # rows % tile_rows == 0: no boundary padding anywhere, no mask at all.
        out_ref[0, :, :] = _block_sum(
            p_ref, t_ref, tile_rows=tile_rows, group_rows=group_rows,
            row_limit=None)
    else:
        i = pl.program_id(0)
        is_last = i == pl.num_programs(0) - 1

        @pl.when(jnp.logical_not(is_last))
        def _():
            out_ref[0, :, :] = _block_sum(
                p_ref, t_ref, tile_rows=tile_rows, group_rows=group_rows,
                row_limit=None)

        @pl.when(is_last)
        def _():
            out_ref[0, :, :] = _block_sum(
                p_ref, t_ref, tile_rows=tile_rows, group_rows=group_rows,
                row_limit=valid_rows - i * tile_rows)


def _huber_sum_pallas(p2d, t2d):
    """Sum of per-element Huber losses over a (rows, 128) array pair."""
    rows = p2d.shape[0]
    itemsize = p2d.dtype.itemsize
    sub_rows = 8 * (4 // itemsize)            # f32 -> 8, bf16 -> 16
    group_rows = max(GROUP_ROWS, sub_rows)    # 256

    if rows <= group_rows:
        tile_rows = _round_up(rows, sub_rows)
        group_rows = tile_rows
    else:
        tile_rows = min(MAX_TILE_ROWS, _round_up(rows, group_rows))

    num_blocks = pl.cdiv(rows, tile_rows)
    needs_row_mask = (rows % tile_rows) != 0

    kernel = functools.partial(
        _huber_partial_kernel,
        tile_rows=tile_rows,
        group_rows=group_rows,
        valid_rows=rows,
        needs_row_mask=needs_row_mask,
    )

    partials = pl.pallas_call(
        kernel,
        out_shape=jax.ShapeDtypeStruct((num_blocks, 8, LANES), jnp.float32),
        grid_spec=pltpu.PrefetchScalarGridSpec(
            num_scalar_prefetch=0,
            grid=(num_blocks,),
            in_specs=[
                pl.BlockSpec((tile_rows, LANES), lambda i: (i, 0)),
                pl.BlockSpec((tile_rows, LANES), lambda i: (i, 0)),
            ],
            out_specs=pl.BlockSpec((1, 8, LANES), lambda i: (i, 0, 0)),
        ),
        compiler_params=pltpu.CompilerParams(
            dimension_semantics=("parallel",),
            vmem_limit_bytes=VMEM_LIMIT_BYTES,
        ),
    )(p2d, t2d)

    return jnp.sum(partials)


def _to_kernel_dtype(x):
    if x.dtype == jnp.float32 or x.dtype == jnp.bfloat16:
        return x
    return x.astype(jnp.float32)


def huber_loss(emb, preds, targets):
    """Pallas implementation of HuberLoss.forward(emb, preds, targets)."""
    del emb  # unused, as in the PyTorch module
    assert preds.shape == targets.shape

    n = int(preds.size)
    p = _to_kernel_dtype(preds.reshape(-1))
    t = _to_kernel_dtype(targets.reshape(-1))
    if p.dtype != t.dtype:
        p = p.astype(jnp.float32)
        t = t.astype(jnp.float32)

    rows_full = n // LANES
    rem = n - rows_full * LANES

    total = jnp.float32(0.0)

    if rows_full > 0:
        if rem:
            p_main = p[: rows_full * LANES]
            t_main = t[: rows_full * LANES]
        else:
            p_main, t_main = p, t  # bitcast reshape, zero copies
        total = total + _huber_sum_pallas(
            p_main.reshape(rows_full, LANES), t_main.reshape(rows_full, LANES))

    if rem:
        # < 128-element ragged tail: scalar finalize in plain JAX (tiny).
        d = p[rows_full * LANES:].astype(jnp.float32) \
            - t[rows_full * LANES:].astype(jnp.float32)
        a = jnp.abs(d)
        total = total + jnp.sum(
            jnp.where(a <= DELTA, 0.5 * d * d, DELTA * (a - 0.5 * DELTA)))

    # mean over the ORIGINAL number of elements, then the fixed /112.5,
    # folded into a single precomputed reciprocal multiply.
    return total * jnp.float32(1.0 / (n * SCALE))


def _huber_loss_ref(preds, targets):
    d = preds.astype(jnp.float32) - targets.astype(jnp.float32)
    a = jnp.abs(d)
    per = jnp.where(a <= DELTA, 0.5 * d * d, DELTA * (a - 0.5 * DELTA))
    return jnp.mean(per) / SCALE


if __name__ == "__main__":
    key = jax.random.PRNGKey(0)
    k_emb, k_pred, k_tgt = jax.random.split(key, 3)

    batch, seq, hidden = 2, 8, 32
    emb = jax.random.normal(k_emb, (batch, seq, hidden), dtype=jnp.float32)

    # Base regression outputs (spread so both Huber branches are exercised).
    preds_full = 10.0 * jax.random.normal(k_pred, (batch, 512), dtype=jnp.float32)
    targets_full = 10.0 * jax.random.normal(k_tgt, (batch, 512), dtype=jnp.float32)

    cases = [
        (preds_full[:, :200], targets_full[:, :200]),  # n=400: kernel (masked last block) + ragged tail
        (preds_full[:, :192], targets_full[:, :192]),  # n=384: lane-aligned, masked last block
        (preds_full, targets_full),                    # n=1024: fully aligned, no-mask fast path
        (preds_full[:, :8], targets_full[:, :8]),      # n=16: tiny, scalar-finalize-only path
    ]

    for preds, targets in cases:
        loss = jax.block_until_ready(huber_loss(emb, preds, targets))
        ref = _huber_loss_ref(preds, targets)
        assert jnp.allclose(loss, ref, rtol=1e-5, atol=1e-6), (preds.shape, loss, ref)

    print("KERNEL_OK")
</pallas_src>

<mosaic_0001>
module attributes {stable_mosaic.version = 11 : i64} {
  func.func @_huber_partial_kernel(%arg0: i32, %arg1: memref<8x128xf32, #tpu.memory_space<vmem>>, %arg2: memref<8x128xf32, #tpu.memory_space<vmem>>, %arg3: memref<1x8x128xf32, #tpu.memory_space<vmem>>) attributes {dimension_semantics = [#tpu.dimension_semantics<parallel>], iteration_bounds = array<i64: 1>, scalar_prefetch = 0 : i64, scratch_operands = 0 : i64, tpu.core_type = #tpu.core_type<tc>, window_params = [{transform_indices = @transform_0, window_bounds = array<i64: 8, 128>}, {transform_indices = @transform_1, window_bounds = array<i64: 8, 128>}, {transform_indices = @transform_2, window_bounds = array<i64: 1, 8, 128>}]} {
    %c0_i32 = arith.constant 0 : i32
    %0 = arith.cmpi eq, %arg0, %c0_i32 : i32
    %true = arith.constant true
    %1 = arith.xori %0, %true : i1
    %2 = arith.extui %1 : i1 to i32
    %c0_i32_0 = arith.constant 0 : i32
    %3 = arith.cmpi ne, %2, %c0_i32_0 : i32
    scf.if %3 {
      %cst = arith.constant 0.000000e+00 : f32
      %6 = vector.broadcast %cst : f32 to vector<8x128xf32>
      %c0_i32_2 = arith.constant 0 : i32
      %c8_i32 = arith.constant 8 : i32
      %7 = arith.muli %c0_i32_2, %c8_i32 : i32
      %8 = tpu.assume_multiple %7, 8 : i32
      %9 = arith.index_cast %8 : i32 to index
      %c0 = arith.constant 0 : index
      %10 = vector.load %arg1[%9, %c0] : memref<8x128xf32, #tpu.memory_space<vmem>>, vector<8x128xf32>
      %11 = arith.index_cast %8 : i32 to index
      %c0_3 = arith.constant 0 : index
      %12 = vector.load %arg2[%11, %c0_3] : memref<8x128xf32, #tpu.memory_space<vmem>>, vector<8x128xf32>
      %13 = arith.subf %10, %12 : vector<8x128xf32>
      %14 = math.absf %13 : vector<8x128xf32>
      %cst_4 = arith.constant 5.000000e+00 : f32
      %15 = vector.broadcast %cst_4 : f32 to vector<8x128xf32>
      %16 = arith.cmpf ole, %14, %15 : vector<8x128xf32>
      %cst_5 = arith.constant 5.000000e-01 : f32
      %17 = vector.broadcast %cst_5 : f32 to vector<8x128xf32>
      %18 = arith.mulf %17, %13 : vector<8x128xf32>
      %19 = arith.mulf %18, %13 : vector<8x128xf32>
      %cst_6 = arith.constant 2.500000e+00 : f32
      %20 = vector.broadcast %cst_6 : f32 to vector<8x128xf32>
      %21 = arith.subf %14, %20 : vector<8x128xf32>
      %cst_7 = arith.constant 5.000000e+00 : f32
      %22 = vector.broadcast %cst_7 : f32 to vector<8x128xf32>
      %23 = arith.mulf %22, %21 : vector<8x128xf32>
      %24 = arith.select %16, %19, %23 : vector<8x128xi1>, vector<8x128xf32>
      %25 = vector.shape_cast %24 : vector<8x128xf32> to vector<1x8x128xf32>
      %cst_8 = arith.constant dense<0.000000e+00> : vector<8x128xf32>
      %26 = vector.multi_reduction <add>, %25, %cst_8 [0] : vector<1x8x128xf32> to vector<8x128xf32>
      %27 = arith.addf %6, %26 : vector<8x128xf32>
      %c1_i32 = arith.constant 1 : i32
      %c0_9 = arith.constant 0 : index
      %c0_10 = arith.constant 0 : index
      %c0_11 = arith.constant 0 : index
      %28 = vector.load %arg3[%c0_9, %c0_10, %c0_11] : memref<1x8x128xf32, #tpu.memory_space<vmem>>, vector<1x8x128xf32>
      %29 = vector.shape_cast %28 : vector<1x8x128xf32> to vector<8x128xf32>
      %30 = vector.shape_cast %27 : vector<8x128xf32> to vector<1x8x128xf32>
      tpu.vector_store %arg3[%c0_9, %c0_10, %c0_11], %30 {strides = array<i32>} : memref<1x8x128xf32, #tpu.memory_space<vmem>>, vector<1x8x128xf32>,
    } else {
    }
    %4 = arith.extui %0 : i1 to i32
    %c0_i32_1 = arith.constant 0 : i32
    %5 = arith.cmpi ne, %4, %c0_i32_1 : i32
    scf.if %5 {
      %c8_i32 = arith.constant 8 : i32
      %6 = arith.muli %arg0, %c8_i32 : i32
      %c3_i32 = arith.constant 3 : i32
      %7 = arith.subi %c3_i32, %6 : i32
      %8 = tpu.iota {dimensions = array<i32: 0>} : vector<8x128xi32>
      %cst = arith.constant 0.000000e+00 : f32
      %9 = vector.broadcast %cst : f32 to vector<8x128xf32>
      %c0_i32_2 = arith.constant 0 : i32
      %c8_i32_3 = arith.constant 8 : i32
      %10 = arith.muli %c0_i32_2, %c8_i32_3 : i32
      %11 = tpu.assume_multiple %10, 8 : i32
      %12 = arith.index_cast %11 : i32 to index
      %c0 = arith.constant 0 : index
      %13 = vector.load %arg1[%12, %c0] : memref<8x128xf32, #tpu.memory_space<vmem>>, vector<8x128xf32>
      %14 = arith.index_cast %11 : i32 to index
      %c0_4 = arith.constant 0 : index
      %15 = vector.load %arg2[%14, %c0_4] : memref<8x128xf32, #tpu.memory_space<vmem>>, vector<8x128xf32>
      %16 = arith.subf %13, %15 : vector<8x128xf32>
      %17 = math.absf %16 : vector<8x128xf32>
      %cst_5 = arith.constant 5.000000e+00 : f32
      %18 = vector.broadcast %cst_5 : f32 to vector<8x128xf32>
      %19 = arith.cmpf ole, %17, %18 : vector<8x128xf32>
      %cst_6 = arith.constant 5.000000e-01 : f32
      %20 = vector.broadcast %cst_6 : f32 to vector<8x128xf32>
      %21 = arith.mulf %20, %16 : vector<8x128xf32>
      %22 = arith.mulf %21, %16 : vector<8x128xf32>
      %cst_7 = arith.constant 2.500000e+00 : f32
      %23 = vector.broadcast %cst_7 : f32 to vector<8x128xf32>
      %24 = arith.subf %17, %23 : vector<8x128xf32>
      %cst_8 = arith.constant 5.000000e+00 : f32
      %25 = vector.broadcast %cst_8 : f32 to vector<8x128xf32>
      %26 = arith.mulf %25, %24 : vector<8x128xf32>
      %27 = arith.select %19, %22, %26 : vector<8x128xi1>, vector<8x128xf32>
      %28 = arith.subi %7, %11 : i32
      %29 = vector.broadcast %28 : i32 to vector<8x128xi32>
      %30 = arith.cmpi slt, %8, %29 : vector<8x128xi32>
      %cst_9 = arith.constant 0.000000e+00 : f32
      %31 = vector.broadcast %cst_9 : f32 to vector<8x128xf32>
      %32 = arith.select %30, %27, %31 : vector<8x128xi1>, vector<8x128xf32>
      %33 = vector.shape_cast %32 : vector<8x128xf32> to vector<1x8x128xf32>
      %cst_10 = arith.constant dense<0.000000e+00> : vector<8x128xf32>
      %34 = vector.multi_reduction <add>, %33, %cst_10 [0] : vector<1x8x128xf32> to vector<8x128xf32>
      %35 = arith.addf %9, %34 : vector<8x128xf32>
      %c1_i32 = arith.constant 1 : i32
      %c0_11 = arith.constant 0 : index
      %c0_12 = arith.constant 0 : index
      %c0_13 = arith.constant 0 : index
      %36 = vector.load %arg3[%c0_11, %c0_12, %c0_13] : memref<1x8x128xf32, #tpu.memory_space<vmem>>, vector<1x8x128xf32>
      %37 = vector.shape_cast %36 : vector<1x8x128xf32> to vector<8x128xf32>
      %38 = vector.shape_cast %35 : vector<8x128xf32> to vector<1x8x128xf32>
      tpu.vector_store %arg3[%c0_11, %c0_12, %c0_13], %38 {strides = array<i32>} : memref<1x8x128xf32, #tpu.memory_space<vmem>>, vector<1x8x128xf32>,
    } else {
    }
    return
  }
  func.func @transform_0(%arg0: i32) -> (i32, i32) {
    %c0_i32 = arith.constant 0 : i32
    %c0_i32_0 = arith.constant 0 : i32
    return %arg0, %c0_i32 : i32, i32
  }
  func.func @transform_1(%arg0: i32) -> (i32, i32) {
    %c0_i32 = arith.constant 0 : i32
    %c0_i32_0 = arith.constant 0 : i32
    return %arg0, %c0_i32 : i32, i32
  }
  func.func @transform_2(%arg0: i32) -> (i32, i32, i32) {
    %c0_i32 = arith.constant 0 : i32
    %c0_i32_0 = arith.constant 0 : i32
    %c0_i32_1 = arith.constant 0 : i32
    return %arg0, %c0_i32, %c0_i32_0 : i32, i32, i32
  }
}

</mosaic_0001>

<bundles_post_ra>
// kernel: tpu_custom_call.1
= control target key start
LH: loop header
LB: loop body
LE: loop exit
PB: predicated region body
PF: predicated region fallthrough
CT: control target
= control target key end

     0   :  { %7 = vsyncpa [#allocation3], 0  ;;  %s200_s0 = inlined_call_operand.hbm [shape: f32[3,128], index: 0, kind: input, shape index: {}]   ;;  %s201_s1 = inlined_call_operand.hbm [shape: f32[3,128], index: 1, kind: input, shape index: {}]   ;;  %s202_s2 = inlined_call_operand.hbm [shape: f32[1,8,128], index: 2, kind: output, shape index: {}]  }
   0x1   :  { %8 = vsyncpa [#allocation6], 0 }
   0x2   :  { %9 = vsyncpa [#allocation4], 0 }
   0x3   :  { %14 = vsyncadd [#allocation3], 64  ;;  %s171_s9 = smov [#allocation2]  }
   0x4   :  { %s15_s10 = sshll.u32 %s171_s9, 4  ;;  %s16_s10 = int_to_ptr.vmem [resolvable:$true] %s15_s10 }
   0x5   :  { %s113_s11 = scalar_lea.vmem %s16_s10, 64  ;;  %s117_s12 = scalar_lea.vmem %s16_s10, 128 }
   0x6   :  { %p114_p0 = scmp.ne.s32.totalorder %s16_s10, %s113_s11  ;;  %p118_p1 = scmp.lt.s32.totalorder %s16_s10, %s16_s10 }
   0x7   :  { %p119_p2 = scmp.lt.s32.totalorder %s117_s12, %s113_s11 }
   0x9   :  { %p120_p3 = por %p119_p2, %p118_p1 }
   0xb   :  { %p121_p4 = pnand %p120_p3, %p114_p0 }
   0xd   :  { %124 = shalt.err (!%p121_p4)
}
   0xe   :  { %s172_s13 = smov 64   ;;  %s173_s14 = smov 4  }
   0xf   :  { %21 = dma.hbm_to_vmem [thread:$0]  %s200_s0, 64, %s16_s10, [#allocation3], %s172_s13, %s172_s13, %s173_s14  }
  0x10   :  { %26 = vsyncadd [#allocation6], 64  ;;  %s174_s17 = smov [#allocation5]  }
  0x11   :  { %s27_s18 = sshll.u32 %s174_s17, 4  ;;  %s28_s18 = int_to_ptr.vmem [resolvable:$true] %s27_s18 }
  0x12   :  { %s133_s19 = scalar_lea.vmem %s28_s18, 64  ;;  %s137_s20 = scalar_lea.vmem %s28_s18, 128 }
  0x13   :  { %p134_p5 = scmp.ne.s32.totalorder %s28_s18, %s133_s19  ;;  %p138_p6 = scmp.lt.s32.totalorder %s28_s18, %s28_s18 }
  0x14   :  { %p139_p7 = scmp.lt.s32.totalorder %s137_s20, %s133_s19 }
  0x16   :  { %p140_p8 = por %p139_p7, %p138_p6 }
  0x18   :  { %p141_p9 = pnand %p140_p8, %p134_p5 }
  0x1a   :  { %144 = shalt.err (!%p141_p9)
}
  0x1b   :  { %33 = dma.hbm_to_vmem [thread:$0]  %s201_s1, 64, %s28_s18, [#allocation6], %s172_s13, %s172_s13, %s173_s14  }
  0x1c   :  { %165 = dma.done.wait [#allocation3], 128  }
  0x1d   :  { %166 = vsyncadd [#allocation3], 4294967168 }
  0x1e   :  { %167 = dma.done.wait [#allocation6], 128  }
  0x1f   :  { %168 = vsyncadd [#allocation6], 4294967168  ;;  %v63_v0 = vlaneseq  ;;  %v65_v1 = vld [vmem:[#allocation2] sm:$0xff]  ;;  %v66_v2 = vld [vmem:[#allocation5] sm:$0xff]  ;;  %s175_s0 = smov [#allocation7]  }
  0x20   :  { %v67_v3 = vsub.f32 %v65_v1, %v66_v2  ;;  %s88_s23 = sshll.u32 %s175_s0, 4  ;;  %s89_s23 = int_to_ptr.vmem [resolvable:$true] %s88_s23 }
  0x21   :  { %v64_v4 = vshrl.u32 %v63_v0, 7  ;;  %s145_s1 = scalar_lea.vmem %s89_s23, 128  ;;  %p150_p11 = scmp.lt.s32.totalorder %s89_s23, %s89_s23 }
  0x22   :  { %v68_v5 = vand.u32 2147483647, %v67_v3  ;;  %v70_v6 = vmul.f32 0.5, %v67_v3  ;;  %p146_p10 = scmp.ne.s32.totalorder %s89_s23, %s145_s1  ;;  %p151_p12 = scmp.lt.s32.totalorder %s145_s1, %s145_s1 }
  0x23   :  { %vm77_vm1 = vcmp.lt.s32.totalorder %v64_v4, 3 }
  0x24   :  { %v71_v7 = vmul.f32 %v70_v6, %v67_v3  ;;  %v99_v8 = vadd.f32 -2.5, %v68_v5  ;;  %vm69_vm0 = vcmp.le.f32.partialorder %v68_v5, 5.0  ;;  %p152_p13 = por %p151_p12, %p150_p11 }
  0x26   :  { %v73_v9 = vmul.f32 5.0, %v99_v8  ;;  %p153_p0 = pnand %p152_p13, %p146_p10 }
  0x28   :  { %v74_v10 = vsel %vm69_vm0, %v71_v7, %v73_v9 }
  0x29   :  { %v78_v11 = vsel %vm77_vm1, %v74_v10, 0.0 }
  0x2a   :  { %81 = vst [vmem:[#allocation7] sm:$0xff] %v78_v11 }
  0x2b   :  { %156 = shalt.err (!%p153_p0)
}
  0x2c   :  { %91 = dma.vmem_to_hbm [thread:$0]  %s89_s23, 128, %s202_s2, [#allocation4]  }
  0x2d   :  { %169 = dma.done.wait [#allocation4], 128  }
  0x2e   :  { %170 = vsyncadd [#allocation4], 4294967168 }
  0x2f   :  { %95 = vsyncpa [#allocation3], 1 }
  0x30   :  { %96 = vsyncpa [#allocation6], 1 }
  0x31   :  { %97 = vsyncpa [#allocation4], 1 }

</bundles_post_ra>
